<compile_context>
chip_gen: v5e
topology: v5e:2x2
jax: 0.10.0
libtpu: 0.0.40
codegen_flags: <defaults>
</compile_context>

<pallas_src>
import functools

import jax
import jax.numpy as jnp
from jax.experimental import pallas as pl
from jax.experimental.pallas import tpu as pltpu

BN_EPS = 1e-5


def _round_up(x: int, m: int) -> int:
    return ((x + m - 1) // m) * m


def _tpu_defaults():
    """(vmem_capacity_bytes, preferred tn). Defensive: falls back to v7x-safe values."""
    vmem_cap = 64 << 20          # v7x per-TC VMEM — the most restrictive generation
    tn_pref = 256
    try:
        info = pltpu.get_tpu_info()
        vmem_cap = int(getattr(info, "vmem_capacity_bytes", vmem_cap))
    except Exception:
        pass
    try:
        kind = jax.devices()[0].device_kind.lower()
        if "v5 lite" in kind or "v5e" in kind or "v5lite" in kind:
            tn_pref = 128        # v5e MXU is 128 wide; also halves resident out/acc tiles
    except Exception:
        pass
    return vmem_cap, tn_pref


def _bn_silu(y, gamma, beta, *, true_n, pad_rows):
    """Training-mode BatchNorm1d (batch stats over axis 0) + SiLU, all in f32."""
    inv_n = 1.0 / float(true_n)                                # 1/true batch, NOT padded batch
    mean = jnp.sum(y, axis=0, keepdims=True) * inv_n           # padded rows are exactly 0
    diff = y - mean
    if pad_rows:
        rows = jax.lax.broadcasted_iota(jnp.int32, y.shape, 0)
        diff = jnp.where(rows < true_n, diff, 0.0)             # keep stats exact w.r.t. true N
    var = jnp.sum(diff * diff, axis=0, keepdims=True) * inv_n  # two-pass (no cancellation)
    scale = jax.lax.rsqrt(var + BN_EPS) * gamma
    z = diff * scale + beta
    return z * jax.nn.sigmoid(z)                               # SiLU (EUP path)


def _mlp_layer_kernel(x_ref, w_ref, gamma_ref, beta_ref, o_ref, *scratch,
                      true_n, pad_rows, tk, num_k, x_resident):
    """Fused Linear (no bias) + BatchNorm1d (batch stats) + SiLU.

    Grid: (j over OUT tiles [parallel]) or (j, k over IN tiles [arbitrary/reduction]).
    x is resident (constant block index) whenever it fits VMEM; W streams per (j, k).
    """
    if num_k == 1:
        y = jnp.dot(x_ref[...], w_ref[...], preferred_element_type=jnp.float32)
        o_ref[...] = _bn_silu(y, gamma_ref[...], beta_ref[...],
                              true_n=true_n, pad_rows=pad_rows).astype(o_ref.dtype)
        return

    # K-tiled path: accumulate directly into the resident output block when it is f32,
    # otherwise into the f32 VMEM scratch.
    acc_ref = scratch[0] if scratch else o_ref
    k = pl.program_id(1)

    @pl.when(k == 0)
    def _():
        acc_ref[...] = jnp.zeros_like(acc_ref)

    if x_resident:
        start = pl.multiple_of(k * tk, 128)
        xk = x_ref[:, pl.ds(start, tk)]
    else:
        xk = x_ref[...]
    acc_ref[...] += jnp.dot(xk, w_ref[...], preferred_element_type=jnp.float32)

    @pl.when(k == num_k - 1)
    def _():
        o_ref[...] = _bn_silu(acc_ref[...], gamma_ref[...], beta_ref[...],
                              true_n=true_n, pad_rows=pad_rows).astype(o_ref.dtype)


class MLPLayerPallas:
    """Fused Linear + BatchNorm1d(train) + SiLU. Weight layout (in_features, out_features)."""

    def __init__(self, w, b, gamma, beta, *,
                 compute_dtype=jnp.bfloat16, out_dtype=jnp.float32,
                 tn=None, max_tk=None):
        self.in_features, self.out_features = int(w.shape[0]), int(w.shape[1])
        self.compute_dtype = jnp.dtype(compute_dtype)
        self.out_dtype = jnp.dtype(out_dtype)
        del b  # training-mode BN subtracts the batch mean, cancelling the linear bias exactly

        self._vmem_cap, tn_pref = _tpu_defaults()
        if tn is not None:
            tn_pref = tn

        out_128 = _round_up(self.out_features, 128)
        tn_eff = min(tn_pref, out_128)
        if out_128 // tn_eff < 2 and out_128 >= 256:
            tn_eff = 128          # >= 2 OUT tiles so both v7x TensorCores get work
        self._tn = tn_eff
        self._out_pad = _round_up(self.out_features, tn_eff)
        self._in_pad = _round_up(self.in_features, 128)

        # K-tile candidates: multiples of 128 dividing in_pad, largest (collapse-K) first.
        m = self._in_pad // 128
        divs = sorted({128 * d for d in range(1, m + 1) if m % d == 0}, reverse=True)
        cands = [self._in_pad] + [t for t in divs if t != self._in_pad and t <= 2048]
        if max_tk is not None:
            cands = [t for t in cands if t <= max_tk] or [128]
        self._tk_candidates = cands

        # Pad + cast parameters ONCE (hoisted out of the per-call path).
        wf = jnp.asarray(w)
        self._wp = jnp.pad(wf, ((0, self._in_pad - self.in_features),
                                (0, self._out_pad - self.out_features))
                           ).astype(self.compute_dtype)
        self._gp = jnp.pad(jnp.asarray(gamma, jnp.float32).reshape(1, -1),
                           ((0, 0), (0, self._out_pad - self.out_features)),
                           constant_values=1.0)
        self._bp = jnp.pad(jnp.asarray(beta, jnp.float32).reshape(1, -1),
                           ((0, 0), (0, self._out_pad - self.out_features)))

        self._row_mult = 16 if self.compute_dtype.itemsize == 2 else 8
        self._cache = {}

    # ---- tiling / VMEM budgeting -------------------------------------------------------
    def _config(self, n: int, n_pad: int):
        cd = self.compute_dtype.itemsize
        ob = self.out_dtype.itemsize
        in_pad, tn = self._in_pad, self._tn
        num_j = self._out_pad // tn
        budget = int(self._vmem_cap * 0.55)      # headroom for Mosaic internals / semaphores

        def est(tk, num_k, x_resident, w_bufs, use_scratch):
            x_bytes = 2 * n_pad * (in_pad if (x_resident or num_k == 1) else tk) * cd
            w_bytes = w_bufs * tk * tn * cd
            o_bytes = 2 * n_pad * tn * ob
            s_bytes = n_pad * tn * 4 if use_scratch else 0
            return x_bytes + w_bytes + o_bytes + s_bytes + 4 * tn * 4 + (1 << 20)

        def pick(x_resident):
            for tk in self._tk_candidates:
                num_k = in_pad // tk
                use_scratch = (self.out_dtype != jnp.float32) and num_k > 1
                if est(tk, num_k, x_resident, 2, use_scratch) <= budget:
                    return dict(tk=tk, num_k=num_k, x_resident=x_resident,
                                use_scratch=use_scratch, w_bufs=2)
            return None

        cfg = pick(True) or pick(False)
        if cfg is None:
            # TODO(synk): for extreme batch sizes also tile the batch dim with a two-pass BN
            # (partial sum / sum-of-squares scratch + a second normalization pass).
            tk = self._tk_candidates[-1]
            num_k = in_pad // tk
            cfg = dict(tk=tk, num_k=num_k, x_resident=False,
                       use_scratch=(self.out_dtype != jnp.float32) and num_k > 1, w_bufs=2)

        # Deeper W buffering for weight-stream-bound (small batch) shapes.
        if n_pad <= 256 and num_j * cfg["num_k"] >= 3:
            if est(cfg["tk"], cfg["num_k"], cfg["x_resident"], 3, cfg["use_scratch"]) <= budget:
                cfg["w_bufs"] = 3

        est_bytes = est(cfg["tk"], cfg["num_k"], cfg["x_resident"],
                        cfg["w_bufs"], cfg["use_scratch"])
        cfg["vmem_limit"] = int(min(int(self._vmem_cap * 0.9), max(32 << 20, 2 * est_bytes)))
        return cfg

    def _build(self, n: int):
        n_pad = _round_up(max(n, 1), self._row_mult)
        cfg = self._config(n, n_pad)
        tn, tk, num_k = self._tn, cfg["tk"], cfg["num_k"]
        in_pad, out_pad = self._in_pad, self._out_pad
        num_j = out_pad // tn

        kernel = functools.partial(
            _mlp_layer_kernel, true_n=n, pad_rows=n_pad - n,
            tk=tk, num_k=num_k, x_resident=cfg["x_resident"])

        w_kwargs = {"pipeline_mode": pl.Buffered(cfg["w_bufs"])} if cfg["w_bufs"] != 2 else {}

        if num_k == 1:
            grid = (num_j,)
            in_specs = [
                pl.BlockSpec((n_pad, in_pad), lambda j: (0, 0)),            # x resident across j
                pl.BlockSpec((in_pad, tn), lambda j: (0, j), **w_kwargs),    # W tile
                pl.BlockSpec((1, tn), lambda j: (0, j)),                     # gamma
                pl.BlockSpec((1, tn), lambda j: (0, j)),                     # beta
            ]
            out_spec = pl.BlockSpec((n_pad, tn), lambda j: (0, j))
            dims = ("parallel",)
        else:
            grid = (num_j, num_k)
            if cfg["x_resident"]:
                x_spec = pl.BlockSpec((n_pad, in_pad), lambda j, k: (0, 0))  # DMA'd once
            else:
                x_spec = pl.BlockSpec((n_pad, tk), lambda j, k: (0, k))      # streamed K-slices
            in_specs = [
                x_spec,
                pl.BlockSpec((tk, tn), lambda j, k: (k, j), **w_kwargs),
                pl.BlockSpec((1, tn), lambda j, k: (0, j)),
                pl.BlockSpec((1, tn), lambda j, k: (0, j)),
            ]
            out_spec = pl.BlockSpec((n_pad, tn), lambda j, k: (0, j))
            dims = ("parallel", "arbitrary")

        scratch = [pltpu.VMEM((n_pad, tn), jnp.float32)] if cfg["use_scratch"] else []

        fn = pl.pallas_call(
            kernel,
            out_shape=jax.ShapeDtypeStruct((n_pad, out_pad), self.out_dtype),
            grid_spec=pltpu.PrefetchScalarGridSpec(
                num_scalar_prefetch=0, grid=grid,
                in_specs=in_specs, out_specs=out_spec, scratch_shapes=scratch),
            compiler_params=pltpu.CompilerParams(
                dimension_semantics=dims, vmem_limit_bytes=cfg["vmem_limit"]),
        )
        return fn, n_pad

    def __call__(self, x):
        n = int(x.shape[0])
        assert x.shape[1] == self.in_features
        entry = self._cache.get(n)
        if entry is None:
            entry = self._build(n)
            self._cache[n] = entry
        fn, n_pad = entry

        xp = x.astype(self.compute_dtype) if x.dtype != self.compute_dtype else x
        if n_pad != n or self._in_pad != self.in_features:        # skip pad when already aligned
            xp = jnp.pad(xp, ((0, n_pad - n), (0, self._in_pad - self.in_features)))

        out = fn(xp, self._wp, self._gp, self._bp)
        if n_pad != n or self._out_pad != self.out_features:       # skip slice when aligned
            out = out[:n, :self.out_features]
        return out


def init_params(key, in_features, out_features):
    """Deterministic init mimicking nn.Linear defaults; BN gamma=1, beta=0."""
    kw, kb = jax.random.split(key)
    bound = 1.0 / float(in_features) ** 0.5
    # PyTorch stores weight as (out, in); we keep it as (in, out) for the kernel.
    w = jax.random.uniform(kw, (in_features, out_features), jnp.float32, -bound, bound)
    b = jax.random.uniform(kb, (out_features,), jnp.float32, -bound, bound)
    gamma = jnp.ones((out_features,), jnp.float32)
    beta = jnp.zeros((out_features,), jnp.float32)
    return w, b, gamma, beta


def mlp_ref(x, w, b, gamma, beta):
    """Pure-JAX reference: Linear (with bias) + training-mode BN + SiLU."""
    y = x @ w + b
    mean = jnp.mean(y, axis=0, keepdims=True)
    var = jnp.mean((y - mean) ** 2, axis=0, keepdims=True)
    z = (y - mean) / jnp.sqrt(var + BN_EPS) * gamma + beta
    return z * jax.nn.sigmoid(z)


if __name__ == "__main__":
    root = jax.random.PRNGKey(0)

    cases = [
        dict(batch=8,  in_f=32,  out_f=32,  out_dtype=jnp.float32,  max_tk=None),  # base, 1 tile
        dict(batch=32, in_f=256, out_f=256, out_dtype=jnp.float32,  max_tk=None),  # 2 OUT tiles
        dict(batch=8,  in_f=256, out_f=128, out_dtype=jnp.float32,  max_tk=128),   # K-tiled, acc in o_ref
        dict(batch=8,  in_f=256, out_f=128, out_dtype=jnp.bfloat16, max_tk=128),   # K-tiled, f32 scratch
    ]

    for idx, c in enumerate(cases):
        kk = jax.random.fold_in(root, idx)
        kx, kp = jax.random.split(kk)
        x = jax.random.normal(kx, (c["batch"], c["in_f"]), jnp.float32)
        w, b, gamma, beta = init_params(kp, c["in_f"], c["out_f"])

        layer = MLPLayerPallas(w, b, gamma, beta, out_dtype=c["out_dtype"], max_tk=c["max_tk"])
        out = layer(x)
        jax.block_until_ready(out)
        assert out.shape == (c["batch"], c["out_f"]), f"case {idx}: bad shape {out.shape}"
        assert out.dtype == jnp.dtype(c["out_dtype"]), f"case {idx}: bad dtype {out.dtype}"

        # Tight check: reference using the same bf16-rounded matmul operands (bias included in
        # the reference — verifying that dropping it in the kernel preserves semantics).
        ref16 = mlp_ref(x.astype(jnp.bfloat16).astype(jnp.float32),
                        w.astype(jnp.bfloat16).astype(jnp.float32), b, gamma, beta)
        out_f = out.astype(jnp.float32)
        if jnp.dtype(c["out_dtype"]) == jnp.float32:
            assert jnp.allclose(out_f, ref16, atol=2e-3, rtol=2e-3), f"case {idx}: tight mismatch"
            # Loose check vs the full-f32 PyTorch-equivalent path (bf16 matmul rounding only).
            ref32 = mlp_ref(x, w, b, gamma, beta)
            assert jnp.allclose(out_f, ref32, atol=5e-2, rtol=5e-2), f"case {idx}: loose mismatch"
        else:
            assert jnp.allclose(out_f, ref16, atol=3e-2, rtol=3e-2), f"case {idx}: bf16-out mismatch"

    print("KERNEL_OK")
</pallas_src>

<mosaic_0001>
module attributes {stable_mosaic.version = 11 : i64} {
  func.func @_mlp_layer_kernel(%arg0: i32, %arg1: memref<16x128xbf16, #tpu.memory_space<vmem>>, %arg2: memref<128x128xbf16, #tpu.memory_space<vmem>>, %arg3: memref<1x128xf32, #tpu.memory_space<vmem>>, %arg4: memref<1x128xf32, #tpu.memory_space<vmem>>, %arg5: memref<16x128xf32, #tpu.memory_space<vmem>>) attributes {dimension_semantics = [#tpu.dimension_semantics<parallel>], iteration_bounds = array<i64: 1>, scalar_prefetch = 0 : i64, scratch_operands = 0 : i64, tpu.core_type = #tpu.core_type<tc>, window_params = [{pipeline_mode = #tpu.pipeline_mode<synchronous>, transform_indices = @transform_0, window_bounds = array<i64: 16, 128>}, {transform_indices = @transform_1, window_bounds = array<i64: 128, 128>}, {transform_indices = @transform_2, window_bounds = array<i64: 1, 128>}, {transform_indices = @transform_3, window_bounds = array<i64: 1, 128>}, {transform_indices = @transform_4, window_bounds = array<i64: 16, 128>}]} {
    %c0 = arith.constant 0 : index
    %c0_0 = arith.constant 0 : index
    %0 = vector.load %arg1[%c0, %c0_0] : memref<16x128xbf16, #tpu.memory_space<vmem>>, vector<16x128xbf16>
    %c0_1 = arith.constant 0 : index
    %c0_2 = arith.constant 0 : index
    %1 = vector.load %arg2[%c0_1, %c0_2] : memref<128x128xbf16, #tpu.memory_space<vmem>>, vector<128x128xbf16>
    %cst = arith.constant dense<0.000000e+00> : vector<16x128xf32>
    %2 = tpu.matmul %0, %1, %cst {dimension_numbers = #tpu.dot_dimension_numbers<[1], [0], [0], [1], [0, 0, 1, 1], [], []>} : vector<16x128xbf16>, vector<128x128xbf16>, vector<16x128xf32> -> vector<16x128xf32>
    %c0_3 = arith.constant 0 : index
    %c0_4 = arith.constant 0 : index
    %3 = vector.load %arg3[%c0_3, %c0_4] : memref<1x128xf32, #tpu.memory_space<vmem>>, vector<1x128xf32>
    %c0_5 = arith.constant 0 : index
    %c0_6 = arith.constant 0 : index
    %4 = vector.load %arg4[%c0_5, %c0_6] : memref<1x128xf32, #tpu.memory_space<vmem>>, vector<1x128xf32>
    %cst_7 = arith.constant dense<0.000000e+00> : vector<128xf32>
    %5 = vector.multi_reduction <add>, %2, %cst_7 [0] : vector<16x128xf32> to vector<128xf32>
    %6 = vector.shape_cast %5 : vector<128xf32> to vector<1x128xf32>
    %cst_8 = arith.constant 1.250000e-01 : f32
    %7 = vector.broadcast %cst_8 : f32 to vector<1x128xf32>
    %8 = arith.mulf %6, %7 : vector<1x128xf32>
    %9 = vector.broadcast %8 : vector<1x128xf32> to vector<16x128xf32>
    %10 = arith.subf %2, %9 : vector<16x128xf32>
    %11 = tpu.iota {dimensions = array<i32: 0>} : vector<16x128xi32>
    %c8_i32 = arith.constant 8 : i32
    %12 = vector.broadcast %c8_i32 : i32 to vector<16x128xi32>
    %13 = arith.cmpi slt, %11, %12 : vector<16x128xi32>
    %cst_9 = arith.constant 0.000000e+00 : f32
    %14 = vector.broadcast %cst_9 : f32 to vector<16x128xf32>
    %15 = arith.select %13, %10, %14 : vector<16x128xi1>, vector<16x128xf32>
    %16 = arith.mulf %15, %15 : vector<16x128xf32>
    %cst_10 = arith.constant dense<0.000000e+00> : vector<128xf32>
    %17 = vector.multi_reduction <add>, %16, %cst_10 [0] : vector<16x128xf32> to vector<128xf32>
    %18 = vector.shape_cast %17 : vector<128xf32> to vector<1x128xf32>
    %cst_11 = arith.constant 1.250000e-01 : f32
    %19 = vector.broadcast %cst_11 : f32 to vector<1x128xf32>
    %20 = arith.mulf %18, %19 : vector<1x128xf32>
    %cst_12 = arith.constant 9.99999974E-6 : f32
    %21 = vector.broadcast %cst_12 : f32 to vector<1x128xf32>
    %22 = arith.addf %20, %21 : vector<1x128xf32>
    %23 = math.rsqrt %22 : vector<1x128xf32>
    %24 = arith.mulf %23, %3 : vector<1x128xf32>
    %25 = vector.broadcast %24 : vector<1x128xf32> to vector<16x128xf32>
    %26 = arith.mulf %15, %25 : vector<16x128xf32>
    %27 = vector.broadcast %4 : vector<1x128xf32> to vector<16x128xf32>
    %28 = arith.addf %26, %27 : vector<16x128xf32>
    %29 = arith.negf %28 : vector<16x128xf32>
    %30 = math.exp %29 : vector<16x128xf32>
    %cst_13 = arith.constant 1.000000e+00 : f32
    %31 = vector.broadcast %cst_13 : f32 to vector<16x128xf32>
    %32 = arith.addf %31, %30 : vector<16x128xf32>
    %33 = arith.divf %31, %32 : vector<16x128xf32>
    %34 = arith.mulf %28, %33 : vector<16x128xf32>
    %c0_14 = arith.constant 0 : index
    %c0_15 = arith.constant 0 : index
    %35 = vector.load %arg5[%c0_14, %c0_15] : memref<16x128xf32, #tpu.memory_space<vmem>>, vector<16x128xf32>
    tpu.vector_store %arg5[%c0_14, %c0_15], %34 {strides = array<i32>} : memref<16x128xf32, #tpu.memory_space<vmem>>, vector<16x128xf32>,
    return
  }
  func.func @transform_0(%arg0: i32) -> (i32, i32) {
    %c0_i32 = arith.constant 0 : i32
    %c0_i32_0 = arith.constant 0 : i32
    %c0_i32_1 = arith.constant 0 : i32
    return %c0_i32, %c0_i32_0 : i32, i32
  }
  func.func @transform_1(%arg0: i32) -> (i32, i32) {
    %c0_i32 = arith.constant 0 : i32
    %c0_i32_0 = arith.constant 0 : i32
    return %c0_i32, %arg0 : i32, i32
  }
  func.func @transform_2(%arg0: i32) -> (i32, i32) {
    %c0_i32 = arith.constant 0 : i32
    %c0_i32_0 = arith.constant 0 : i32
    return %c0_i32, %arg0 : i32, i32
  }
  func.func @transform_3(%arg0: i32) -> (i32, i32) {
    %c0_i32 = arith.constant 0 : i32
    %c0_i32_0 = arith.constant 0 : i32
    return %c0_i32, %arg0 : i32, i32
  }
  func.func @transform_4(%arg0: i32) -> (i32, i32) {
    %c0_i32 = arith.constant 0 : i32
    %c0_i32_0 = arith.constant 0 : i32
    return %c0_i32, %arg0 : i32, i32
  }
}

</mosaic_0001>

<bundles_post_ra>
// kernel: tpu_custom_call.1
= control target key start
LH: loop header
LB: loop body
LE: loop exit
PB: predicated region body
PF: predicated region fallthrough
CT: control target
= control target key end

     0   :  { %9 = vsyncpa [#allocation3], 0  ;;  %s437_s0 = inlined_call_operand.hbm [shape: bf16[16,128], index: 0, kind: input, shape index: {}]   ;;  %s438_s1 = inlined_call_operand.hbm [shape: bf16[128,128], index: 1, kind: input, shape index: {}]   ;;  %s439_s2 = inlined_call_operand.vmem [shape: f32[1,128], index: 2, kind: input, shape index: {}]   ;;  %s440_s3 = inlined_call_operand.vmem [shape: f32[1,128], index: 3, kind: input, shape index: {}]   ;;  %s441_s4 = inlined_call_operand.hbm [shape: f32[16,128], index: 4, kind: output, shape index: {}]  }
   0x1   :  { %10 = vsyncpa [#allocation6], 0 }
   0x2   :  { %11 = vsyncpa [#allocation4], 0  ;;  %s16_s17 = sshll.u32 %s437_s0, 4  ;;  %s390_s18 = smov [#allocation2]   ;;  %s17_s17 = int_to_ptr.hbm [resolvable:$true] %s16_s17 }
   0x3   :  { %s18_s19 = sshll.u32 %s390_s18, 4  ;;  %s29_s22 = sshll.u32 %s438_s1, 4  ;;  %s19_s19 = int_to_ptr.vmem [resolvable:$true] %s18_s19  ;;  %s30_s22 = int_to_ptr.hbm [resolvable:$true] %s29_s22 }
   0x4   :  { %s391_s23 = smov 64   ;;  %s392_s24 = smov 4  }
   0x5   :  { %24 = dma.hbm_to_vmem [thread:$0]  %s17_s17, 128, %s19_s19, [#allocation3], %s391_s23, %s391_s23, %s392_s24  }
   0x6   :  { %s393_s25 = smov [#allocation5]  }
   0x7   :  { %s31_s26 = sshll.u32 %s393_s25, 4  ;;  %s32_s26 = int_to_ptr.vmem [resolvable:$true] %s31_s26 }
   0x8   :  { %37 = dma.hbm_to_vmem [thread:$0]  %s30_s22, 1024, %s32_s26, [#allocation6], %s391_s23, %s391_s23, %s392_s24  }
   0x9   :  { %384 = dma.done.wait [#allocation3], 128  }
   0xa   :  { %385 = vsyncadd [#allocation3], 4294967168 }
   0xb   :  { %386 = dma.done.wait [#allocation6], 1024  }
   0xc   :  { %387 = vsyncadd [#allocation6], 4294966272  ;;  %v293_v0 = vld [vmem:[#allocation5 + $0x38] sm:$0xff]  ;;  %v292_v1 = vld [vmem:[#allocation5 + $0x30] sm:$0xff]  ;;  %s233_s5 = sshll.u32 %s441_s4, 4  ;;  %s395_s6 = smov 128   ;;  %s234_s5 = int_to_ptr.hbm [resolvable:$true] %s233_s5 }
   0xd   :  { %122 = vmatpush.bf16.msra.mxu0 %v293_v0  ;;  %v291_v2 = vld [vmem:[#allocation5 + $0x28] sm:$0xff]  ;;  %v290_v3 = vld [vmem:[#allocation5 + $0x20] sm:$0xff]  ;;  %v289_v4 = vld [vmem:[#allocation5 + $0x18] sm:$0xff]  ;;  %s396_s7 = smov 8  }
   0xe   :  { %v288_v5 = vld [vmem:[#allocation5 + $0x10] sm:$0xff]  ;;  %v287_v6 = vld [vmem:[#allocation5 + $0x8] sm:$0xff]  ;;  %v286_v7 = vld [vmem:[#allocation5] sm:$0xff] }
   0xf   :  { %v285_v8 = vld [vmem:[#allocation2] sm:$0xff] }
  0x10   :  { %v136_v34 = vld [vmem:[%s439_s2] sm:$0x1]  ;;  %s394_s2 = smov [#allocation7]  }
  0x11   :  { %123 = vmatpush.bf16.msra.mxu0 %v292_v1  ;;  %v301_v39 = vld [vmem:[%s440_s3] ss:$0 sm:$0xff]  ;;  %s231_s3 = sshll.u32 %s394_s2, 4  ;;  %s232_s3 = int_to_ptr.vmem [resolvable:$true] %s231_s3 }
  0x15   :  { %124 = vmatpush.bf16.msra.mxu0 %v291_v2 }
  0x19   :  { %125 = vmatpush.bf16.msra.mxu0 %v290_v3 }
  0x1d   :  { %126 = vmatpush.bf16.msra.mxu0 %v289_v4 }
  0x21   :  { %127 = vmatpush.bf16.msra.mxu0 %v288_v5 }
  0x25   :  { %128 = vmatpush.bf16.msra.mxu0 %v287_v6 }
  0x29   :  { %129 = vmatpush.bf16.msra.mxu0 %v286_v7 }
  0x2c   :  { %130 = vmatmul.bf16.vlgmr.msra.gmra.mxu0 %v285_v8 }
  0xa9   :  { %v131_v9 = vpop.f32.mrf.mxu0 }
  0xb1   :  { %v133_v10 = vpop.f32.mrf.mxu0 }
  0xb2   :  { %v138_v11 = vadd.f32 %v133_v10, %v131_v9 }
  0xb4   :  { %v139_v12 = vrot.slane %v138_v11, 4 }
  0xb6   :  { %v140_v13 = vadd.f32 %v139_v12, %v138_v11 }
  0xb8   :  { %v141_v14 = vrot.slane %v140_v13, 2 }
  0xba   :  { %v142_v15 = vadd.f32 %v141_v14, %v140_v13 }
  0xbc   :  { %v143_v16 = vrot.slane %v142_v15, 1 }
  0xbe   :  { %v144_v17 = vadd.f32 %v143_v16, %v142_v15 }
  0xc0   :  { %v145_v18 = vmul.f32 0.125, %v144_v17 }
  0xc2   :  { %v146_v19 = vsub.f32 %v131_v9, %v145_v18 }
  0xc4   :  { %v155_v20 = vmul.f32 %v146_v19, %v146_v19 }
  0xc6   :  { %v158_v21 = vrot.slane %v155_v20, 4 }
  0xc8   :  { %v159_v22 = vadd.f32 %v158_v21, %v155_v20 }
  0xca   :  { %v160_v23 = vrot.slane %v159_v22, 2 }
  0xcc   :  { %v161_v24 = vadd.f32 %v160_v23, %v159_v22 }
  0xce   :  { %v162_v25 = vrot.slane %v161_v24, 1 }
  0xd0   :  { %v163_v26 = vadd.f32 %v162_v25, %v161_v24 }
  0xd2   :  { %v164_v27 = vmul.f32 0.125, %v163_v26 }
  0xd4   :  { %v165_v28 = vadd.f32 1e-05, %v164_v27 }
  0xd6   :  { %302 = vrsqrt.f32 %v165_v28  ;;  %vm172_vm1 = vweird.f32 %v165_v28 }
  0xdc   :  { %v303_v29 = vpop.eup %302 }
  0xdd   :  { %v167_v30 = vmul.f32 %v303_v29, %v165_v28  ;;  %vm173_vm0 = vweird.f32 %v303_v29 }
  0xde   :  { %vm174_vm2 = vmor %vm172_vm1, %vm173_vm0 }
  0xdf   :  { %v168_v31 = vmul.f32 %v303_v29, %v167_v30 }
  0xe1   :  { %v169_v32 = vmul.f32 0.5, %v168_v31 }
  0xe3   :  { %v170_v33 = vsub.f32 1.5, %v169_v32 }
  0xe5   :  { %v171_v35 = vmul.f32 %v303_v29, %v170_v33 }
  0xe7   :  { %v175_v36 = vsel %vm174_vm2, %v303_v29, %v171_v35 }
  0xe8   :  { %v176_v37 = vmul.f32 %v175_v36, %v136_v34 }
  0xea   :  { %v177_v38 = vperm.slane %v176_v37, 0 }
  0xec   :  { %v178_v40 = vmul.f32 %v177_v38, %v146_v19  ;;  %v179_v41 = vmul.f32 0.0, %v177_v38 }
  0xee   :  { %v183_v42 = vadd.f32 %v301_v39, %v178_v40  ;;  %v184_v43 = vadd.f32 %v301_v39, %v179_v41 }
  0xf0   :  { %v283_v44 = vmul.f32 -1.442695, %v183_v42  ;;  %v284_v45 = vmul.f32 -1.442695, %v184_v43 }
  0xf2   :  { %304 = vpow2.f32 %v283_v44 }
  0xf3   :  { %306 = vpow2.f32 %v284_v45 }
  0xf8   :  { %v305_v46 = vpop.eup %304 }
  0xf9   :  { %v307_v47 = vpop.eup %306  ;;  %v191_v48 = vadd.f32 1.0, %v305_v46 }
  0xfa   :  { %v192_v49 = vadd.f32 1.0, %v307_v47 }
  0xfb   :  { %308 = vrcp.f32 %v191_v48  ;;  %v204_v55 = vand.u32 2147483648, %v191_v48  ;;  %v202_v58 = vand.u32 2147483647, %v191_v48  ;;  %vm198_vm5 = vweird.f32 %v191_v48 }
  0xfc   :  { %310 = vrcp.f32 %v192_v49  ;;  %v219_v59 = vand.u32 2147483648, %v192_v49  ;;  %v217_v61 = vand.u32 2147483647, %v192_v49  ;;  %vm213_vm7 = vweird.f32 %v192_v49 }
  0xfd   :  { %v205_v63 = vor.u32 1.1754944e-38, %v204_v55  ;;  %vm203_vm8 = vcmp.eq.f32.partialorder %v202_v58, 8.507059e+37 }
  0xfe   :  { %v220_v2 = vor.u32 1.1754944e-38, %v219_v59  ;;  %vm218_vm10 = vcmp.eq.f32.partialorder %v217_v61, 8.507059e+37 }
 0x101   :  { %v309_v50 = vpop.eup %308 }
 0x102   :  { %v311_v51 = vpop.eup %310  ;;  %v194_v52 = vmul.f32 %v309_v50, %v191_v48  ;;  %vm199_vm3 = vweird.f32 %v309_v50 }
 0x103   :  { %v209_v53 = vmul.f32 %v311_v51, %v192_v49  ;;  %vm214_vm4 = vweird.f32 %v311_v51  ;;  %vm200_vm6 = vmor %vm198_vm5, %vm199_vm3 }
 0x104   :  { %v195_v54 = vsub.f32 1.0, %v194_v52  ;;  %vm215_vm9 = vmor %vm213_vm7, %vm214_vm4 }
 0x105   :  { %v210_v56 = vsub.f32 1.0, %v209_v53 }
 0x106   :  { %v196_v57 = vmul.f32 %v309_v50, %v195_v54 }
 0x107   :  { %v211_v60 = vmul.f32 %v311_v51, %v210_v56 }
 0x108   :  { %v197_v62 = vadd.f32 %v309_v50, %v196_v57 }
 0x109   :  { %v212_v0 = vadd.f32 %v311_v51, %v211_v60 }
 0x10a   :  { %v201_v1 = vsel %vm200_vm6, %v309_v50, %v197_v62 }
 0x10b   :  { %v206_v3 = vsel %vm203_vm8, %v205_v63, %v201_v1  ;;  %v216_v4 = vsel %vm215_vm9, %v311_v51, %v212_v0 }
 0x10c   :  { %v221_v5 = vsel %vm218_vm10, %v220_v2, %v216_v4  ;;  %v223_v6 = vmul.f32 %v206_v3, %v183_v42 }
 0x10d   :  { %v224_v7 = vmul.f32 %v221_v5, %v184_v43 }
 0x10e   :  { %225 = vst [vmem:[#allocation7] sm:$0xff] %v223_v6 }
 0x10f   :  { %226 = vst [vmem:[#allocation7 + $0x8] sm:$0xff] %v224_v7 }
 0x110   :  { %239 = dma.vmem_to_hbm [thread:$0]  %s232_s3, 256, %s234_s5, [#allocation4], %s395_s6, %s395_s6, %s396_s7  }
 0x111   :  { %388 = dma.done.wait [#allocation4], 256  }
 0x112   :  { %389 = vsyncadd [#allocation4], 4294967040 }
 0x113   :  { %244 = vsyncpa [#allocation3], 1 }
 0x114   :  { %245 = vsyncpa [#allocation6], 1 }
 0x115   :  { %246 = vsyncpa [#allocation4], 1 }

</bundles_post_ra>
